<compile_context>
chip_gen: v6e
topology: v6e:2x2x1
jax: 0.10.0
libtpu: 0.0.40
codegen_flags: <defaults>
</compile_context>

<pallas_src>
import functools

import jax
import jax.numpy as jnp
from jax.experimental import pallas as pl
from jax.experimental.pallas import tpu as pltpu


# -----------------------------------------------------------------------------
# Pass 1: fused global min/max of rgb_ws and rgb_ns (single read of each).
# -----------------------------------------------------------------------------
def _bounds_kernel(ws_ref, ns_ref, out_ref, *, rows, tile_rows, masked):
    # ws_ref / ns_ref: VMEM (3, tile_rows, Wl); out_ref: SMEM (4,) f32
    t = pl.program_id(1)
    ws = ws_ref[...]
    ns = ns_ref[...]

    if masked:
        # The last row-tile hangs past the array; keep its padding rows out of
        # the min/max.
        row_ids = jax.lax.broadcasted_iota(jnp.int32, ws.shape[-2:], 0)
        valid = (row_ids < (rows - t * tile_rows))[None, :, :]
        inf = jnp.float32(jnp.inf)
        ws_lo, ws_hi = jnp.where(valid, ws, inf), jnp.where(valid, ws, -inf)
        ns_lo, ns_hi = jnp.where(valid, ns, inf), jnp.where(valid, ns, -inf)
    else:
        ws_lo = ws_hi = ws
        ns_lo = ns_hi = ns

    ws_min, ws_max = jnp.min(ws_lo), jnp.max(ws_hi)
    ns_min, ns_max = jnp.min(ns_lo), jnp.max(ns_hi)

    first = jnp.logical_and(pl.program_id(0) == 0, t == 0)

    @pl.when(first)
    def _():
        out_ref[0] = ws_min
        out_ref[1] = ws_max
        out_ref[2] = ns_min
        out_ref[3] = ns_max

    @pl.when(jnp.logical_not(first))
    def _():
        out_ref[0] = jnp.minimum(out_ref[0], ws_min)
        out_ref[1] = jnp.maximum(out_ref[1], ws_max)
        out_ref[2] = jnp.minimum(out_ref[2], ns_min)
        out_ref[3] = jnp.maximum(out_ref[3], ns_max)


# -----------------------------------------------------------------------------
# Pass 2: elementwise IID transform (HBM-bandwidth bound).
# -----------------------------------------------------------------------------
def _iid_kernel(scalars_ref, ws_ref, ns_ref, alb_ref,
                shadow_ref, alb_out_ref, shad_out_ref):
    # scalars_ref: SMEM (4,) = [ws_min, ws_max, ns_min, ns_max] (global bounds)
    # ws/ns/alb + shadow/albedo_out refs: VMEM (3, tile_rows, Wl)
    # shading out ref: VMEM (tile_rows, Wl) — dense, reshaped to (N,1,H,W) outside.
    ws_min = scalars_ref[0]
    ws_max = scalars_ref[1]
    ns_min = scalars_ref[2]
    ns_max = scalars_ref[3]

    ws = ws_ref[...]
    ns = ns_ref[...]
    alb = alb_ref[...]

    # ---- extract_shadow --------------------------------------------------
    shadow_ref[...] = jnp.clip(ns - ws, ws_min, ws_max)

    # ---- extract_shading(one_channel=True) --------------------------------
    alb_filled = jnp.where(alb <= 0.01, 1.0, alb)
    shading_rgb = ns / alb_filled                              # (3, tR, Wl)
    gray = (0.299 * shading_rgb[0]
            + 0.587 * shading_rgb[1]
            + 0.114 * shading_rgb[2])                          # (tR, Wl)
    shading = jnp.clip(gray, ns_min, ns_max)

    # ---- final_albedo = clip(ns / maskfill(shading), min, max) ------------
    # True divide (not reciprocal*mul) for bit-fidelity; the kernel stays
    # HBM-bound even on v7x so the extra divides do not change wall time.
    shading_filled = jnp.where(shading <= 0.01, 1.0, shading)
    final_albedo = jnp.clip(ns / shading_filled[None, :, :], ns_min, ns_max)

    # ---- Normalize((0.5,), (0.5,)): 2x - 1 --------------------------------
    alb_out_ref[...] = final_albedo * 2.0 - 1.0
    # `shading` is already clipped to [ns_min, ns_max]; second clip is a no-op.
    shad_out_ref[...] = shading * 2.0 - 1.0


# -----------------------------------------------------------------------------
# Tile / VMEM sizing helpers.
# -----------------------------------------------------------------------------
def _vmem_budget():
    """Per-generation scoped-VMEM budget with headroom for compiler scratch."""
    try:
        cap = int(pltpu.get_tpu_info().vmem_capacity_bytes)
    except Exception:
        cap = 64 * 1024 * 1024  # conservative fallback (v7x-sized)
    # 3/4 of physical VMEM, capped at 96 MiB (v5e/v6e have 128 MiB physical,
    # v7x has 64 MiB -> ~48 MiB budget).
    return min(cap * 3 // 4, 96 * 1024 * 1024)


def _pick_tile_rows(n_batch, rows, lanes, vmem_budget):
    """Largest row-tile that fits the VMEM budget, with >=4 grid steps when splittable."""
    # 16 f32 planes per tile row (3 inputs x 3ch + 3ch + 3ch + 1ch outputs),
    # each double-buffered by the Pallas pipeline.
    per_row = 2 * 16 * lanes * 4
    cap = max(8, (vmem_budget - (4 << 20)) // per_row)
    tile = min(rows, cap)
    if tile < rows:
        tile = max(8, (tile // 8) * 8)   # block sublane dim must be 8-aligned
    # Give the two v7x TensorCores at least 4 grid steps (harmless on 1-TC chips).
    while n_batch * (-(-rows // tile)) < 4 and tile >= 16:
        tile = max(8, (tile // 2) // 8 * 8)
    return tile


# -----------------------------------------------------------------------------
# Wrapper.
# -----------------------------------------------------------------------------
def iid_transform(rgb_ws, rgb_ns, albedo, tile_rows=None):
    """Pallas implementation of IIDTransform.forward.

    Args:   rgb_ws, rgb_ns, albedo: float arrays of shape (N, 3, H, W).
    Returns: (rgb_ws, rgb_ns, albedo_refined (N,3,H,W),
              shading_refined (N,1,H,W), shadow_matte (N,3,H,W))
    """
    N, C, H, W = rgb_ws.shape
    assert C == 3, "rgb_to_grayscale requires 3 input channels"

    ws = rgb_ws.astype(jnp.float32)
    ns = rgb_ns.astype(jnp.float32)
    alb = albedo.astype(jnp.float32)

    # Lane-dense layout: flatten spatial dims to (S, 128) when possible (free
    # contiguous reshape) so every output store is unmasked and 128-lane wide.
    if (H * W) % 128 == 0:
        R, Wl = (H * W) // 128, 128
    else:
        # TODO(synk): H*W not a multiple of 128 keeps the (H, W) layout with
        # lane-padded (masked) stores; pad in the caller to avoid this path.
        R, Wl = H, W

    ws4 = ws.reshape(N, C, R, Wl)
    ns4 = ns.reshape(N, C, R, Wl)
    alb4 = alb.reshape(N, C, R, Wl)

    vmem_budget = _vmem_budget()
    if tile_rows is None:
        tile_rows = _pick_tile_rows(N, R, Wl, vmem_budget)
    tile_rows = min(int(tile_rows), R)
    n_row_tiles = pl.cdiv(R, tile_rows)
    grid = (N, n_row_tiles)

    img_spec = pl.BlockSpec((None, C, tile_rows, Wl), lambda n, t: (n, 0, t, 0))
    one_spec = pl.BlockSpec((None, tile_rows, Wl), lambda n, t: (n, t, 0))

    # ---- pass 1: global min/max of ws and ns (one fused read of each) -----
    bounds = pl.pallas_call(
        functools.partial(_bounds_kernel, rows=R, tile_rows=tile_rows,
                          masked=(R % tile_rows != 0)),
        grid=grid,
        out_shape=jax.ShapeDtypeStruct((4,), jnp.float32),
        in_specs=[img_spec, img_spec],
        out_specs=pl.BlockSpec(memory_space=pltpu.MemorySpace.SMEM),
        compiler_params=pltpu.CompilerParams(
            dimension_semantics=("arbitrary", "arbitrary"),
            vmem_limit_bytes=vmem_budget),
    )(ws4, ns4)

    # ---- pass 2: the transform itself --------------------------------------
    px = N * H * W
    cost = pl.CostEstimate(flops=60 * px, transcendentals=6 * px,
                           bytes_accessed=16 * px * 4)

    shadow, alb_out, shad_out = pl.pallas_call(
        _iid_kernel,
        grid=grid,
        out_shape=(
            jax.ShapeDtypeStruct((N, C, R, Wl), jnp.float32),  # shadow_matte
            jax.ShapeDtypeStruct((N, C, R, Wl), jnp.float32),  # albedo_refined
            jax.ShapeDtypeStruct((N, R, Wl), jnp.float32),     # shading (dense)
        ),
        in_specs=[
            pl.BlockSpec(memory_space=pltpu.MemorySpace.SMEM),  # 4 bounds
            img_spec, img_spec, img_spec,
        ],
        out_specs=(img_spec, img_spec, one_spec),
        compiler_params=pltpu.CompilerParams(
            dimension_semantics=("parallel", "parallel"),
            vmem_limit_bytes=vmem_budget),
        cost_estimate=cost,
    )(bounds, ws4, ns4, alb4)

    return (
        rgb_ws,
        rgb_ns,
        alb_out.reshape(N, C, H, W),
        shad_out.reshape(N, 1, H, W),
        shadow.reshape(N, C, H, W),
    )


# -----------------------------------------------------------------------------
# Pure-JAX reference + checks.
# -----------------------------------------------------------------------------
def _reference(rgb_ws, rgb_ns, albedo):
    ws_min, ws_max = jnp.min(rgb_ws), jnp.max(rgb_ws)
    shadow = jnp.clip(rgb_ns - rgb_ws, ws_min, ws_max)

    ns_min, ns_max = jnp.min(rgb_ns), jnp.max(rgb_ns)
    alb_filled = jnp.where(albedo <= 0.01, 1.0, albedo)
    shading_rgb = rgb_ns / alb_filled
    gray = (0.299 * shading_rgb[:, 0:1] + 0.587 * shading_rgb[:, 1:2]
            + 0.114 * shading_rgb[:, 2:3])
    shading = jnp.clip(gray, ns_min, ns_max)
    shading_filled = jnp.where(shading <= 0.01, 1.0, shading)
    final_albedo = jnp.clip(rgb_ns / shading_filled, ns_min, ns_max)
    final_shading = jnp.clip(shading, ns_min, ns_max)
    return (rgb_ws, rgb_ns, final_albedo * 2.0 - 1.0,
            final_shading * 2.0 - 1.0, shadow)


def _check(rgb_ws, rgb_ns, albedo, tile_rows=None):
    outs = jax.block_until_ready(iid_transform(rgb_ws, rgb_ns, albedo, tile_rows))
    refs = _reference(rgb_ws, rgb_ns, albedo)
    for o, r in zip(outs, refs):
        assert o.shape == r.shape, (o.shape, r.shape)
        assert jnp.allclose(o, r, atol=1e-5, rtol=1e-5), \
            float(jnp.max(jnp.abs(o - r)))


if __name__ == "__main__":
    key = jax.random.PRNGKey(0)
    k1, k2, k3 = jax.random.split(key, 3)

    def make(shape):
        return (jax.random.uniform(k1, shape, dtype=jnp.float32),
                jax.random.uniform(k2, shape, dtype=jnp.float32),
                jax.random.uniform(k3, shape, dtype=jnp.float32))

    # 1) Small NCHW case: lane-dense path collapses (16,16) -> (2, 128).
    _check(*make((2, 3, 16, 16)))

    # 2) Lane-dense path with a pipelined multi-step grid (R = 32).
    _check(*make((2, 3, 32, 128)))

    # 3) Non-divisible row count with an explicit small tile: exercises the
    #    masked last tile in the bounds pass and partial output blocks (R=9).
    _check(*make((2, 3, 24, 48)), tile_rows=8)

    # 4) H*W not a multiple of 128: fallback (H, W) layout.
    _check(*make((2, 3, 10, 10)))

    print("KERNEL_OK")
</pallas_src>

<mosaic_0001>
module attributes {stable_mosaic.version = 11 : i64} {
  func.func @_bounds_kernel(%arg0: i32, %arg1: i32, %arg2: memref<1x3x2x128xf32, #tpu.memory_space<vmem>>, %arg3: memref<1x3x2x128xf32, #tpu.memory_space<vmem>>, %arg4: memref<4xf32, #tpu.memory_space<smem>>) attributes {dimension_semantics = [#tpu.dimension_semantics<arbitrary>, #tpu.dimension_semantics<arbitrary>], iteration_bounds = array<i64: 2, 1>, scalar_prefetch = 0 : i64, scratch_operands = 0 : i64, tpu.core_type = #tpu.core_type<tc>, window_params = [{transform_indices = @transform_0, window_bounds = array<i64: 1, 3, 2, 128>}, {transform_indices = @transform_1, window_bounds = array<i64: 1, 3, 2, 128>}, {transform_indices = @transform_2, window_bounds = array<i64: 4>}]} {
    %c0 = arith.constant 0 : index
    %c0_0 = arith.constant 0 : index
    %c0_1 = arith.constant 0 : index
    %c0_2 = arith.constant 0 : index
    %0 = vector.load %arg2[%c0, %c0_0, %c0_1, %c0_2] : memref<1x3x2x128xf32, #tpu.memory_space<vmem>>, vector<1x3x2x128xf32>
    %1 = vector.shape_cast %0 : vector<1x3x2x128xf32> to vector<3x2x128xf32>
    %c0_3 = arith.constant 0 : index
    %c0_4 = arith.constant 0 : index
    %c0_5 = arith.constant 0 : index
    %c0_6 = arith.constant 0 : index
    %2 = vector.load %arg3[%c0_3, %c0_4, %c0_5, %c0_6] : memref<1x3x2x128xf32, #tpu.memory_space<vmem>>, vector<1x3x2x128xf32>
    %3 = vector.shape_cast %2 : vector<1x3x2x128xf32> to vector<3x2x128xf32>
    %4 = vector.shape_cast %1 : vector<3x2x128xf32> to vector<1x3x2x128xf32>
    %cst = arith.constant dense<0x7F800000> : vector<1xf32>
    %5 = vector.multi_reduction <minimumf>, %4, %cst [1, 2, 3] : vector<1x3x2x128xf32> to vector<1xf32>
    %6 = vector.shape_cast %5 : vector<1xf32> to vector<1x1x1x1xf32>
    %7 = vector.extract %6[0, 0, 0, 0] : f32 from vector<1x1x1x1xf32>
    %8 = vector.shape_cast %1 : vector<3x2x128xf32> to vector<1x3x2x128xf32>
    %cst_7 = arith.constant dense<0xFF800000> : vector<1xf32>
    %9 = vector.multi_reduction <maximumf>, %8, %cst_7 [1, 2, 3] : vector<1x3x2x128xf32> to vector<1xf32>
    %10 = vector.shape_cast %9 : vector<1xf32> to vector<1x1x1x1xf32>
    %11 = vector.extract %10[0, 0, 0, 0] : f32 from vector<1x1x1x1xf32>
    %12 = vector.shape_cast %3 : vector<3x2x128xf32> to vector<1x3x2x128xf32>
    %cst_8 = arith.constant dense<0x7F800000> : vector<1xf32>
    %13 = vector.multi_reduction <minimumf>, %12, %cst_8 [1, 2, 3] : vector<1x3x2x128xf32> to vector<1xf32>
    %14 = vector.shape_cast %13 : vector<1xf32> to vector<1x1x1x1xf32>
    %15 = vector.extract %14[0, 0, 0, 0] : f32 from vector<1x1x1x1xf32>
    %16 = vector.shape_cast %3 : vector<3x2x128xf32> to vector<1x3x2x128xf32>
    %cst_9 = arith.constant dense<0xFF800000> : vector<1xf32>
    %17 = vector.multi_reduction <maximumf>, %16, %cst_9 [1, 2, 3] : vector<1x3x2x128xf32> to vector<1xf32>
    %18 = vector.shape_cast %17 : vector<1xf32> to vector<1x1x1x1xf32>
    %19 = vector.extract %18[0, 0, 0, 0] : f32 from vector<1x1x1x1xf32>
    %c0_i32 = arith.constant 0 : i32
    %20 = arith.cmpi eq, %arg0, %c0_i32 : i32
    %c0_i32_10 = arith.constant 0 : i32
    %21 = arith.cmpi eq, %arg1, %c0_i32_10 : i32
    %22 = arith.andi %20, %21 : i1
    %23 = arith.extui %22 : i1 to i32
    %c0_i32_11 = arith.constant 0 : i32
    %24 = arith.cmpi ne, %23, %c0_i32_11 : i32
    scf.if %24 {
      %c0_13 = arith.constant 0 : index
      %28 = memref.load %arg4[%c0_13] : memref<4xf32, #tpu.memory_space<smem>>
      memref.store %7, %arg4[%c0_13] : memref<4xf32, #tpu.memory_space<smem>>
      %c1 = arith.constant 1 : index
      %29 = memref.load %arg4[%c1] : memref<4xf32, #tpu.memory_space<smem>>
      memref.store %11, %arg4[%c1] : memref<4xf32, #tpu.memory_space<smem>>
      %c2 = arith.constant 2 : index
      %30 = memref.load %arg4[%c2] : memref<4xf32, #tpu.memory_space<smem>>
      memref.store %15, %arg4[%c2] : memref<4xf32, #tpu.memory_space<smem>>
      %c3 = arith.constant 3 : index
      %31 = memref.load %arg4[%c3] : memref<4xf32, #tpu.memory_space<smem>>
      memref.store %19, %arg4[%c3] : memref<4xf32, #tpu.memory_space<smem>>
    } else {
    }
    %true = arith.constant true
    %25 = arith.xori %22, %true : i1
    %26 = arith.extui %25 : i1 to i32
    %c0_i32_12 = arith.constant 0 : i32
    %27 = arith.cmpi ne, %26, %c0_i32_12 : i32
    scf.if %27 {
      %c0_13 = arith.constant 0 : index
      %28 = memref.load %arg4[%c0_13] : memref<4xf32, #tpu.memory_space<smem>>
      %29 = arith.minimumf %28, %7 : f32
      %c0_14 = arith.constant 0 : index
      %30 = memref.load %arg4[%c0_14] : memref<4xf32, #tpu.memory_space<smem>>
      memref.store %29, %arg4[%c0_14] : memref<4xf32, #tpu.memory_space<smem>>
      %c1 = arith.constant 1 : index
      %31 = memref.load %arg4[%c1] : memref<4xf32, #tpu.memory_space<smem>>
      %32 = arith.maximumf %31, %11 : f32
      %c1_15 = arith.constant 1 : index
      %33 = memref.load %arg4[%c1_15] : memref<4xf32, #tpu.memory_space<smem>>
      memref.store %32, %arg4[%c1_15] : memref<4xf32, #tpu.memory_space<smem>>
      %c2 = arith.constant 2 : index
      %34 = memref.load %arg4[%c2] : memref<4xf32, #tpu.memory_space<smem>>
      %35 = arith.minimumf %34, %15 : f32
      %c2_16 = arith.constant 2 : index
      %36 = memref.load %arg4[%c2_16] : memref<4xf32, #tpu.memory_space<smem>>
      memref.store %35, %arg4[%c2_16] : memref<4xf32, #tpu.memory_space<smem>>
      %c3 = arith.constant 3 : index
      %37 = memref.load %arg4[%c3] : memref<4xf32, #tpu.memory_space<smem>>
      %38 = arith.maximumf %37, %19 : f32
      %c3_17 = arith.constant 3 : index
      %39 = memref.load %arg4[%c3_17] : memref<4xf32, #tpu.memory_space<smem>>
      memref.store %38, %arg4[%c3_17] : memref<4xf32, #tpu.memory_space<smem>>
    } else {
    }
    return
  }
  func.func @transform_0(%arg0: i32, %arg1: i32) -> (i32, i32, i32, i32) {
    %c0_i32 = arith.constant 0 : i32
    %c0_i32_0 = arith.constant 0 : i32
    %c0_i32_1 = arith.constant 0 : i32
    return %arg0, %c0_i32, %arg1, %c0_i32_0 : i32, i32, i32, i32
  }
  func.func @transform_1(%arg0: i32, %arg1: i32) -> (i32, i32, i32, i32) {
    %c0_i32 = arith.constant 0 : i32
    %c0_i32_0 = arith.constant 0 : i32
    %c0_i32_1 = arith.constant 0 : i32
    return %arg0, %c0_i32, %arg1, %c0_i32_0 : i32, i32, i32, i32
  }
  func.func @transform_2(%arg0: i32, %arg1: i32) -> i32 {
    %c0_i32 = arith.constant 0 : i32
    %c0_i32_0 = arith.constant 0 : i32
    return %c0_i32 : i32
  }
}

</mosaic_0001>

<bundles_post_ra>
// kernel: tpu_custom_call.1
= control target key start
LH: loop header
LB: loop body
LE: loop exit
PB: predicated region body
PF: predicated region fallthrough
CT: control target
= control target key end

     0   :  { %7 = vsyncpa [#allocation3], 0  ;;  %s801_s0 = inlined_call_operand.hbm [shape: f32[2,3,2,128], index: 0, kind: input, shape index: {}]   ;;  %s802_s1 = inlined_call_operand.hbm [shape: f32[2,3,2,128], index: 1, kind: input, shape index: {}]   ;;  %s803_s2 = inlined_call_operand.hbm [shape: f32[4], index: 2, kind: output, shape index: {}]  }
   0x1   :  { %9 = vsyncpa [#allocation3 + $0x1], 0 }
   0x2   :  { %10 = vsyncpa [#allocation6], 0 }
   0x3   :  { %12 = vsyncpa [#allocation6 + $0x1], 0 }
   0x4   :  { %13 = vsyncpa [#allocation4], 0  ;;  %s649_s9 = smov 0   ;;  %s651_s10 = smov 0  }
   0x5   :  { %s653_s11 = smov 0   ;;  %s655_s12 = smov 0  }
   0x6   :  { %s657_s13 = smov 0   ;;  %s659_s14 = smov 0  }
   0x7 LB: > { %s396_s15 = sadd.s32 4294967295, %s627_s14   ;;  %s31_s16 = sadd.s32 1, %s623_s13  ;;  %s627_s14 = sphi %s659_s14, %s19_s14   ;;  %s623_s13 = sphi %s657_s13, %s811_s13   ;;  %s619_s12 = sphi %s655_s12, %s810_s12   ;;  %s615_s11 = sphi %s653_s11, %s809_s11   ;;  %s611_s10 = sphi %s651_s10, %s808_s10   ;;  %s607_s9 = sphi %s649_s9, %s807_s9  }
   0x8   : > { %p33_p0 = scmp.ge.s32.totalorder %s31_s16, 2  ;;  %s40_s17 = sadd.s32 1, %s615_s11 }
   0x9   : > { %p47_p1 = scmp.ne.s32.totalorder %s615_s11, %s611_s10  ;;  %p48_p2 = scmp.eq.s32.totalorder %s627_s14, 0 }
   0xa   : > { %s813_s16 = smov (%p33_p0, %s31_s16), 0  ;;  %p53_p4 = scmp.ne.s32.totalorder %s611_s10, %s607_s9 }
   0xb   : > { %p49_p3 = por %p48_p2, %p47_p1  ;;  %s35_s18 = ssub.s32 %s623_s13, %s813_s16 }
   0xc   : > { %p54_p5 = scmp.eq.s32.totalorder %s396_s15, 0  ;;  %p38_p6 = scmp.eq.s32.totalorder %s35_s18, 0 }
   0xd   : > { %p448_p8 = scmp.lt.s32.totalorder %s627_s14, 2  ;;  %s699_s21 = sand.u32 1, %s615_s11  }
   0xe   : > { %p690_p7 = por %p54_p5, %p53_p4  ;;  %s412_s22 = smul.u32 96, %s623_s13 }
   0xf   : > { %s696_s20 = scalar_select %p38_p6, %s615_s11, %s40_s17  }
  0x10   : > { %s411_s23 = smul.u32 6, %s699_s21  ;;  %s137_s26 = scalar_lea.hbm %s801_s0, %s412_s22 }
  0x11   : > { %p708_p9 = pnand %p448_p8, %p49_p3  ;;  %s127_s30 = scalar_lea.sflag [#allocation3], %s699_s21 }
  0x12   : > { %s130_s28 = scalar_lea.vmem [#allocation2], %s411_s23  ;;  %s629_s4 = smov [#allocation2]  }
  0x13   : > { %s138_s29 = sshll.u32 %s130_s28, 4  ;;  %p505_p10 = pneg %p708_p9  ;;  %s139_s29 = int_to_ptr.vmem [resolvable:$true] %s138_s29 }
  0x14   : > { %s516_s3 = scalar_lea.vmem %s139_s29, 96  ;;  %s521_s5 = sshll.u32 %s629_s4, 4  ;;  %s522_s5 = int_to_ptr.vmem [resolvable:$false] %s521_s5 }
  0x15   : > { %p517_p11 = scmp.ne.s32.totalorder %s139_s29, %s516_s3  ;;  %s523_s6 = scalar_lea.vmem %s522_s5, 192 }
  0x16   : > { %p524_p0 = scmp.lt.s32.totalorder %s139_s29, %s522_s5  ;;  %p525_p1 = scmp.lt.s32.totalorder %s523_s6, %s516_s3 }
  0x17   : > { %p519_p12 = pnand %p517_p11, %p505_p10 }
  0x18   : > { %p526_p2 = por %p525_p1, %p524_p0 }
  0x19   : > { %p520_p13 = pneg %p519_p12 }
  0x1b   : > { %p527_p3 = pnand %p526_p2, %p520_p13 }
  0x1d   : > { %530 = shalt.err (!%p527_p3)
}
  0x1e   : > { %s630_s7 = smov 32   ;;  %s631_s8 = smov 2  }
  0x1f   : > { %444 = dma.hbm_to_vmem [thread:$0]  (!%p708_p9), %s137_s26, 96, %s139_s29, %s127_s30, %s630_s7, %s630_s7, %s631_s8  }
  0x20   : > { %p401_p4 = scmp.ge.s32.totalorder %s627_s14, 1  ;;  %p168_p5 = scmp.lt.s32.totalorder %s627_s14, 3 }
  0x21   : > { %s159_s24 = scalar_lea.hbm %s802_s1, %s412_s22  ;;  %s152_s25 = scalar_lea.vmem [#allocation5], %s411_s23 }
  0x22   : > { %p722_p6 = pnand %p401_p4, %p168_p5  ;;  %s160_s28 = sshll.u32 %s152_s25, 4  ;;  %s161_s28 = int_to_ptr.vmem [resolvable:$true] %s160_s28 }
  0x23   : > { %s149_s3 = scalar_lea.sflag [#allocation6], %s699_s21  ;;  %s544_s4 = scalar_lea.vmem %s161_s28, 96 }
  0x24   : > { %p545_p8 = scmp.ne.s32.totalorder %s161_s28, %s544_s4  ;;  %s632_s26 = smov [#allocation5]  }
  0x25   : > { %s549_s29 = sshll.u32 %s632_s26, 4  ;;  %s550_s29 = int_to_ptr.vmem [resolvable:$false] %s549_s29 }
  0x26   : > { %p547_p11 = pnand %p545_p8, %p505_p10  ;;  %s551_s30 = scalar_lea.vmem %s550_s29, 192 }
  0x27   : > { %p552_p13 = scmp.lt.s32.totalorder %s161_s28, %s550_s29  ;;  %p553_p0 = scmp.lt.s32.totalorder %s551_s30, %s544_s4 }
  0x28   : > { %p548_p12 = pneg %p547_p11 }
  0x29   : > { %p554_p1 = por %p553_p0, %p552_p13 }
  0x2b   : > { %p555_p2 = pnand %p554_p1, %p548_p12 }
  0x2d   : > { %558 = shalt.err (!%p555_p2)
}
  0x2e   : > { %447 = dma.hbm_to_vmem [thread:$0]  (!%p708_p9), %s159_s24, 96, %s161_s28, %s149_s3, %s630_s7, %s630_s7, %s631_s8  }
  0x2f   : > { %172 = sbr.rel (%p722_p6) target bundleno = 285 (0x11d), region = 28  ;;  %s174_s21 = sand.u32 (!%p722_p6), 1, %s611_s10  }
  0x30   : > { %s415_s22 = smul.u32 (!%p722_p6), 6, %s174_s21  ;;  %s175_s23 = scalar_lea.sflag (!%p722_p6), [#allocation3], %s174_s21 }
  0x32   : > { %s178_s5 = scalar_lea.vmem (!%p722_p6), [#allocation2], %s415_s22 }
  0x34   : > { %594 = dma.done.wait (%p690_p7), %s175_s23, 96  }
  0x35   : > { %596 = vsyncadd (%p690_p7), %s175_s23, 4294967200  ;;  %s184_s6 = scalar_lea.sflag [#allocation6], %s174_s21  ;;  %s187_s17 = scalar_lea.vmem [#allocation5], %s415_s22 }
  0x36   : > { %598 = dma.done.wait (%p690_p7), %s184_s6, 96  }
  0x37   : > { %600 = vsyncadd (%p690_p7), %s184_s6, 4294967200  ;;  %vm214_vm0 = vcmask 1041408   ;;  %v211_v0 = vld [vmem:[%s187_s17] sm:$0x3]  ;;  %v212_v1 = vld [vmem:[%s187_s17 + $0x2] sm:$0x3] }
  0x38   : > { %v213_v2 = vld [vmem:[%s187_s17 + $0x4] sm:$0x3]  ;;  %v243_v3 = vsel %vm214_vm0, %v211_v0, inf  ;;  %v244_v4 = vsel %vm214_vm0, %v212_v1, inf  ;;  %v208_v6 = vld [vmem:[%s178_s5] sm:$0x3] }
  0x39   : > { %v245_v5 = vsel %vm214_vm0, %v213_v2, inf  ;;  %v257_v7 = vsel %vm214_vm0, %v211_v0, -inf  ;;  %v246_v8 = vmin.f32 %v243_v3, %v244_v4  ;;  %v209_v9 = vld [vmem:[%s178_s5 + $0x2] sm:$0x3]  ;;  %v210_v10 = vld [vmem:[%s178_s5 + $0x4] sm:$0x3] }
  0x3a   : > { %v215_v11 = vsel %vm214_vm0, %v208_v6, inf  ;;  %v258_v12 = vsel %vm214_vm0, %v212_v1, -inf  ;;  %v216_v13 = vsel %vm214_vm0, %v209_v9, inf  ;;  %v217_v14 = vsel %vm214_vm0, %v210_v10, inf  ;;  %p271_p7 = scmp.eq.s32.totalorder %s619_s12, 0  ;;  %p449_p9 = scmp.ne.s32.totalorder %s619_s12, 0 }
  0x3b   : > { %v259_v15 = vsel %vm214_vm0, %v213_v2, -inf  ;;  %v260_v16 = vmax.f32 %v257_v7, %v258_v12  ;;  %v247_v17 = vmin.f32 %v246_v8, %v245_v5  ;;  %v218_v18 = vmin.f32 %v215_v11, %v216_v13  ;;  %p450_p10 = scmp.eq.s32.totalorder %s396_s15, 1  ;;  %s633_s29 = smov [#allocation7]  }
  0x3c   : > { %v229_v19 = vsel %vm214_vm0, %v208_v6, -inf  ;;  %v230_v20 = vsel %vm214_vm0, %v209_v9, -inf  ;;  %v231_v21 = vsel %vm214_vm0, %v210_v10, -inf }
  0x3d   : > { %v232_v22 = vmax.f32 %v229_v19, %v230_v20  ;;  %248 = vmin.xlane.f32.xlu1 %v247_v17  ;;  %v219_v23 = vmin.f32 %v218_v18, %v217_v14  ;;  %v261_v24 = vmax.f32 %v260_v16, %v259_v15 }
  0x3f   : > { %220 = vmin.xlane.f32.xlu0 %v219_v23  ;;  %v233_v25 = vmax.f32 %v232_v22, %v231_v21 }
  0x41   : > { %262 = vmax.xlane.f32.xlu1 %v261_v24 }
  0x43   : > { %234 = vmax.xlane.f32.xlu0 %v233_v25 }
  0xc6   : > { %v249_v26 = vpop.xlane.xlu1 %248 }
  0xc7   : > { %v250_v27 = vrot.slane %v249_v26, 4 }
  0xc8   : > { %v221_v28 = vpop.xlane.xlu0 %220 }
  0xc9   : > { %v251_v29 = vmin.f32 %v249_v26, %v250_v27  ;;  %v222_v30 = vrot.slane %v221_v28, 4 }
  0xca   : > { %v263_v31 = vpop.xlane.xlu1 %262 }
  0xcb   : > { %v223_v32 = vmin.f32 %v221_v28, %v222_v30  ;;  %v264_v33 = vrot.slane %v263_v31, 4  ;;  %v252_v34 = vrot.slane %v251_v29, 2 }
  0xcc   : > { %v235_v35 = vpop.xlane.xlu0 %234 }
  0xcd   : > { %v224_v36 = vrot.slane %v223_v32, 2  ;;  %v265_v37 = vmax.f32 %v263_v31, %v264_v33  ;;  %v236_v38 = vrot.slane %v235_v35, 4  ;;  %v253_v42 = vmin.f32 %v251_v29, %v252_v34 }
  0xcf   : > { %v266_v39 = vrot.slane %v265_v37, 2  ;;  %v237_v40 = vmax.f32 %v235_v35, %v236_v38  ;;  %v225_v41 = vmin.f32 %v223_v32, %v224_v36  ;;  %v254_v49 = vrot.slane %v253_v42, 1 }
  0xd1   : > { %v267_v43 = vmax.f32 %v265_v37, %v266_v39  ;;  %v238_v44 = vrot.slane %v237_v40, 2  ;;  %v226_v45 = vrot.slane %v225_v41, 1  ;;  %v255_v53 = vmin.f32 %v253_v42, %v254_v49 }
  0xd3   : > { %v239_v46 = vmax.f32 %v237_v40, %v238_v44  ;;  %v227_v47 = vmin.f32 %v225_v41, %v226_v45  ;;  %v268_v48 = vrot.slane %v267_v43, 1 }
  0xd5   : > { %416 = vpush %v227_v47  ;;  %v240_v50 = vrot.slane %v239_v46, 1  ;;  %v269_v52 = vmax.f32 %v267_v43, %v268_v48 }
  0xd7   : > { %v241_v51 = vmax.f32 %v239_v46, %v240_v50 }
  0xd9   : > { %418 = vpush %v241_v51 }
  0xda   : > { %420 = vpush %v255_v53 }
  0xdb   : > { %422 = vpush %v269_v52 }
 0x106   : > { %s417_s19 = spop %416 }
 0x107   : > { %428 = sst [smem:[#allocation7]] (%p271_p7), %s417_s19 }
 0x108   : > { %s288_s27 = sld [smem:[#allocation7]] }
 0x10a   : > { %s419_s7 = spop %418 }
 0x10b   : > { %429 = sst [smem:[#allocation7 + $0x1]] (%p271_p7), %s419_s7  ;;  %s421_s8 = spop %420 }
 0x10c   : > { %s403_s9 = sld [smem:[#allocation7 + $0x1]]  ;;  %s423_s18 = spop %422 }
 0x10d   : > { %430 = sst [smem:[#allocation7 + $0x2]] (%p271_p7), %s421_s8 }
 0x10e   : > { %s289_s24 = smin.f32 %s417_s19, %s288_s27  ;;  %s404_s25 = sld [smem:[#allocation7 + $0x2]] }
 0x10f   : > { %433 = sst [smem:[#allocation7]] (%p449_p9), %s289_s24 }
 0x110   : > { %431 = sst [smem:[#allocation7 + $0x3]] (%p271_p7), %s423_s18 }
 0x111   : > { %s405_s28 = sld [smem:[#allocation7 + $0x3]] }
 0x112   : > { %s293_s3 = smax.f32 %s419_s7, %s403_s9 }
 0x113   : > { %434 = sst [smem:[#allocation7 + $0x1]] (%p449_p9), %s293_s3 }
 0x114   : > { %s297_s4 = smin.f32 %s421_s8, %s404_s25 }
 0x115   : > { %435 = sst [smem:[#allocation7 + $0x2]] (%p449_p9), %s297_s4 }
 0x117   : > { %s301_s26 = smax.f32 %s423_s18, %s405_s28 }
 0x118   : > { %436 = sst [smem:[#allocation7 + $0x3]] (%p449_p9), %s301_s26 }
 0x119   : > { %438 = dma.smem_to_hbm (%p450_p10), %s633_s29, 16, %s803_s2, [#allocation4]  }
 0x11a   : > { %602 = dma.done.wait (%p450_p10), [#allocation4], 16  }
 0x11b   : > { %604 = vsyncadd (%p450_p10), [#allocation4], 4294967280 }
 0x11c   : > { %317 = sfence }
 0x11d PF: > { %s19_s14 = sadd.s32 1, %s627_s14   ;;  %s807_s9 = smov %s611_s10 }
 0x11e   : > { %p16_p3 = scmp.ge.s32.totalorder %s19_s14, 4   ;;  %s808_s10 = smov %s615_s11 }
 0x11f   : > { %s809_s11 = smov %s696_s20  ;;  %s810_s12 = smov %s623_s13 }
 0x120   : > { %s811_s13 = smov %s813_s16  ;;  %18 = sbr.rel (!%p16_p3) target bundleno = 7 (0x7), region = 94 }
 0x125   :  { %323 = vsyncpa [#allocation3], 1 }
 0x126   :  { %325 = vsyncpa [#allocation3 + $0x1], 1 }
 0x127   :  { %326 = vsyncpa [#allocation6], 1 }
 0x128   :  { %328 = vsyncpa [#allocation6 + $0x1], 1 }
 0x129   :  { %329 = vsyncpa [#allocation4], 1 }
 0x12a   :  { %331 = vsyncpa [#allocation4 + $0x1], 1 }

</bundles_post_ra>
